<compile_context>
chip_gen: v5e
topology: v5e:2x2
jax: 0.10.0
libtpu: 0.0.40
codegen_flags: <defaults>
</compile_context>

<pallas_src>
import functools

import jax
import jax.numpy as jnp
from jax.experimental import pallas as pl
from jax.experimental.pallas import tpu as pltpu


def _round_up(x, m):
    return (x + m - 1) // m * m


def _pick_row_tile(total_rows, cap=256):
    """Largest row-tile <= cap that divides total_rows and is a multiple of 8."""
    if total_rows <= cap:
        return total_rows
    for t in range(cap, 7, -1):
        if total_rows % t == 0 and t % 8 == 0:
            return t
    return total_rows  # single tile (block == full dim is always legal)


def _fused_conv_bn_relu_kernel(cols_ref, w_ref, gamma_ref, beta_ref,   # inputs
                               out_ref,                                 # output
                               y_scr, sum_scr, sumsq_scr,               # scratch
                               scale_scr, shift_scr,
                               *, total_rows, eps):
    p = pl.program_id(0)    # 0: conv + stats accumulation, 1: normalize + ReLU
    r = pl.program_id(1)    # row-tile index

    @pl.when(p == 0)
    def _conv_and_stats():
        @pl.when(r == 0)
        def _init():
            sum_scr[...] = jnp.zeros_like(sum_scr)
            sumsq_scr[...] = jnp.zeros_like(sumsq_scr)

        # Single MXU matmul: (T, 9*Cin) x (9*Cin, Cpad) -> (T, Cpad), f32 acc.
        acc = jnp.dot(cols_ref[...], w_ref[...],
                      preferred_element_type=jnp.float32)
        y_scr[r] = acc
        # One-pass batch statistics (per-channel sum and sum of squares).
        sum_scr[...] += jnp.sum(acc, axis=0, keepdims=True)
        sumsq_scr[...] += jnp.sum(acc * acc, axis=0, keepdims=True)

    @pl.when(p == 1)
    def _normalize_relu():
        @pl.when(r == 0)
        def _finalize_stats():
            inv_n = 1.0 / float(total_rows)
            mean = sum_scr[...] * inv_n
            var = jnp.maximum(sumsq_scr[...] * inv_n - mean * mean, 0.0)
            inv_std = jax.lax.rsqrt(var + eps)
            scale = gamma_ref[...] * inv_std
            scale_scr[...] = scale
            shift_scr[...] = beta_ref[...] - mean * scale

        y = y_scr[r]
        out_ref[...] = jnp.maximum(
            y * scale_scr[...] + shift_scr[...], 0.0).astype(out_ref.dtype)


def conv_block_forward(x_nchw, w_oihw, conv_bias, gamma, beta,
                       eps=1e-5, matmul_dtype=jnp.float32):
    """conv_block forward (3x3 conv, stride 1, pad 1 -> BatchNorm2d -> ReLU).

    Inputs/outputs are NCHW / OIHW, matching the PyTorch module.
    matmul_dtype=jnp.bfloat16 is a further bandwidth/MXU win on v6e/v7x
    (f32 kept as default for exact parity with the PyTorch reference).
    """
    del conv_bias  # Exactly cancelled by train-mode BatchNorm's mean subtraction.

    N, Cin, H, W = x_nchw.shape
    Cout = w_oihw.shape[0]
    K = 9 * Cin
    total_rows = N * H * W

    # ---- layout plumbing in the wrapper (cheap XLA ops) ---------------------
    x_nhwc = jnp.transpose(x_nchw, (0, 2, 3, 1))
    x_pad = jnp.pad(x_nhwc, ((0, 0), (1, 1), (1, 1), (0, 0)))
    # im2col: (N*H*W, 9*Cin); tap order (kh outer, kw inner) matches w_flat.
    cols = jnp.concatenate(
        [x_pad[:, kh:kh + H, kw:kw + W, :] for kh in range(3) for kw in range(3)],
        axis=-1).reshape(total_rows, K).astype(matmul_dtype)

    # Weights (O, I, 3, 3) -> (9*I, O); output channels padded lane-dense.
    Cpad = _round_up(max(Cout, 128), 128)
    pad_c = Cpad - Cout
    w_flat = jnp.transpose(w_oihw, (2, 3, 1, 0)).reshape(K, Cout)
    w_flat = jnp.pad(w_flat, ((0, 0), (0, pad_c))).astype(matmul_dtype)
    gamma_p = jnp.pad(gamma.astype(jnp.float32), (0, pad_c)).reshape(1, Cpad)
    beta_p = jnp.pad(beta.astype(jnp.float32), (0, pad_c)).reshape(1, Cpad)

    # ---- tiling -------------------------------------------------------------
    T = _pick_row_tile(total_rows)
    R = total_rows // T

    # The un-normalized conv output stays resident in VMEM for the whole call.
    y_scratch_bytes = total_rows * Cpad * 4
    assert y_scratch_bytes <= 16 * 1024 * 1024, (
        "activation too large for the VMEM-resident fused kernel; "
        "use a two-call (partial-stats) variant for this size")

    itemsize = jnp.dtype(matmul_dtype).itemsize
    vmem_need = (y_scratch_bytes
                 + 2 * (T * K * itemsize + K * Cpad * itemsize + T * Cpad * 4)
                 + 8 * Cpad * 4)
    vmem_limit = int(min(max(2 * vmem_need, 16 * 1024 * 1024), 64 * 1024 * 1024))

    kernel = functools.partial(_fused_conv_bn_relu_kernel,
                               total_rows=total_rows, eps=eps)

    out = pl.pallas_call(
        kernel,
        out_shape=jax.ShapeDtypeStruct((total_rows, Cpad), jnp.float32),
        grid_spec=pltpu.PrefetchScalarGridSpec(
            num_scalar_prefetch=0,
            grid=(2, R),   # (pass: conv+stats / normalize) x (row tiles)
            in_specs=[
                # During pass 1 keep pointing at the last pass-0 block so no
                # redundant cols DMA is issued (cols is not read in pass 1).
                pl.BlockSpec((T, K), lambda p, r: ((1 - p) * r + p * (R - 1), 0)),
                pl.BlockSpec((K, Cpad), lambda p, r: (0, 0)),
                pl.BlockSpec((1, Cpad), lambda p, r: (0, 0)),
                pl.BlockSpec((1, Cpad), lambda p, r: (0, 0)),
            ],
            # All pass-0 steps alias output block 0 (never stored, never
            # flushed); each output block is written exactly once in pass 1.
            out_specs=pl.BlockSpec((T, Cpad), lambda p, r: (p * r, 0)),
            scratch_shapes=[
                pltpu.VMEM((R, T, Cpad), jnp.float32),   # resident conv output
                pltpu.VMEM((1, Cpad), jnp.float32),      # per-channel sum
                pltpu.VMEM((1, Cpad), jnp.float32),      # per-channel sum of squares
                pltpu.VMEM((1, Cpad), jnp.float32),      # BN scale
                pltpu.VMEM((1, Cpad), jnp.float32),      # BN shift
            ],
        ),
        compiler_params=pltpu.CompilerParams(
            # Both axes carry state in VMEM scratch (stats / resident y), so
            # they must stay sequential on one core.
            dimension_semantics=("arbitrary", "arbitrary"),
            vmem_limit_bytes=vmem_limit,
        ),
    )(cols, w_flat, gamma_p, beta_p)

    out = out.reshape(N, H, W, Cpad)[..., :Cout]
    return jnp.transpose(out, (0, 3, 1, 2))


def _reference_conv_block(x, w, b, gamma, beta, eps=1e-5):
    """Pure-JAX reference matching the PyTorch module (train-mode BN)."""
    y = jax.lax.conv_general_dilated(
        x, w, window_strides=(1, 1), padding=((1, 1), (1, 1)),
        dimension_numbers=("NCHW", "OIHW", "NCHW"))
    y = y + b.reshape(1, -1, 1, 1)
    mean = jnp.mean(y, axis=(0, 2, 3), keepdims=True)
    var = jnp.mean((y - mean) ** 2, axis=(0, 2, 3), keepdims=True)
    out = (y - mean) * jax.lax.rsqrt(var + eps)
    out = out * gamma.reshape(1, -1, 1, 1) + beta.reshape(1, -1, 1, 1)
    return jnp.maximum(out, 0.0)


if __name__ == "__main__":
    key = jax.random.PRNGKey(0)
    k_x, k_w, k_b = jax.random.split(key, 3)

    N, Cin, H, W = 2, 4, 16, 16
    Cout = 8

    x = jax.random.normal(k_x, (N, Cin, H, W), dtype=jnp.float32)

    # Parameter init matching nn.Conv2d / nn.BatchNorm2d defaults.
    fan_in = Cin * 3 * 3
    bound = 1.0 / (fan_in ** 0.5)
    w = jax.random.uniform(k_w, (Cout, Cin, 3, 3), jnp.float32, -bound, bound)
    b = jax.random.uniform(k_b, (Cout,), jnp.float32, -bound, bound)
    gamma = jnp.ones((Cout,), jnp.float32)   # BatchNorm2d weight init
    beta = jnp.zeros((Cout,), jnp.float32)   # BatchNorm2d bias init

    out = jax.block_until_ready(conv_block_forward(x, w, b, gamma, beta))
    assert out.shape == (N, Cout, H, W), out.shape

    ref = jax.block_until_ready(_reference_conv_block(x, w, b, gamma, beta))
    max_err = float(jnp.max(jnp.abs(out - ref)))
    assert max_err < 2e-3, f"max abs error vs reference: {max_err}"

    print("KERNEL_OK")
</pallas_src>

<mosaic_0001>
module attributes {stable_mosaic.version = 11 : i64} {
  func.func @_fused_conv_bn_relu_kernel(%arg0: i32, %arg1: i32, %arg2: memref<256x36xf32, #tpu.memory_space<vmem>>, %arg3: memref<36x128xf32, #tpu.memory_space<vmem>>, %arg4: memref<1x128xf32, #tpu.memory_space<vmem>>, %arg5: memref<1x128xf32, #tpu.memory_space<vmem>>, %arg6: memref<256x128xf32, #tpu.memory_space<vmem>>, %arg7: memref<2x256x128xf32, #tpu.memory_space<vmem>>, %arg8: memref<1x128xf32, #tpu.memory_space<vmem>>, %arg9: memref<1x128xf32, #tpu.memory_space<vmem>>, %arg10: memref<1x128xf32, #tpu.memory_space<vmem>>, %arg11: memref<1x128xf32, #tpu.memory_space<vmem>>) attributes {dimension_semantics = [#tpu.dimension_semantics<arbitrary>, #tpu.dimension_semantics<arbitrary>], iteration_bounds = array<i64: 2, 2>, scalar_prefetch = 0 : i64, scratch_operands = 5 : i64, tpu.core_type = #tpu.core_type<tc>, window_params = [{transform_indices = @transform_0, window_bounds = array<i64: 256, 36>}, {pipeline_mode = #tpu.pipeline_mode<synchronous>, transform_indices = @transform_1, window_bounds = array<i64: 36, 128>}, {pipeline_mode = #tpu.pipeline_mode<synchronous>, transform_indices = @transform_2, window_bounds = array<i64: 1, 128>}, {pipeline_mode = #tpu.pipeline_mode<synchronous>, transform_indices = @transform_3, window_bounds = array<i64: 1, 128>}, {transform_indices = @transform_4, window_bounds = array<i64: 256, 128>}]} {
    %c0_i32 = arith.constant 0 : i32
    %0 = arith.cmpi eq, %arg0, %c0_i32 : i32
    %1 = arith.extui %0 : i1 to i32
    %c0_i32_0 = arith.constant 0 : i32
    %2 = arith.cmpi ne, %1, %c0_i32_0 : i32
    scf.if %2 {
      %c0_i32_2 = arith.constant 0 : i32
      %6 = arith.cmpi eq, %arg1, %c0_i32_2 : i32
      %7 = arith.extui %6 : i1 to i32
      %c0_i32_3 = arith.constant 0 : i32
      %8 = arith.cmpi ne, %7, %c0_i32_3 : i32
      scf.if %8 {
        %cst_19 = arith.constant 0.000000e+00 : f32
        %27 = vector.broadcast %cst_19 : f32 to vector<1x128xf32>
        %c0_20 = arith.constant 0 : index
        %c0_21 = arith.constant 0 : index
        %28 = vector.load %arg8[%c0_20, %c0_21] : memref<1x128xf32, #tpu.memory_space<vmem>>, vector<1x128xf32>
        tpu.vector_store %arg8[%c0_20, %c0_21], %27 {strides = array<i32>} : memref<1x128xf32, #tpu.memory_space<vmem>>, vector<1x128xf32>,
        %cst_22 = arith.constant 0.000000e+00 : f32
        %29 = vector.broadcast %cst_22 : f32 to vector<1x128xf32>
        %c0_23 = arith.constant 0 : index
        %c0_24 = arith.constant 0 : index
        %30 = vector.load %arg9[%c0_23, %c0_24] : memref<1x128xf32, #tpu.memory_space<vmem>>, vector<1x128xf32>
        tpu.vector_store %arg9[%c0_23, %c0_24], %29 {strides = array<i32>} : memref<1x128xf32, #tpu.memory_space<vmem>>, vector<1x128xf32>,
      } else {
      }
      %c0 = arith.constant 0 : index
      %c0_4 = arith.constant 0 : index
      %9 = vector.load %arg2[%c0, %c0_4] : memref<256x36xf32, #tpu.memory_space<vmem>>, vector<256x36xf32>
      %c0_5 = arith.constant 0 : index
      %c0_6 = arith.constant 0 : index
      %10 = vector.load %arg3[%c0_5, %c0_6] : memref<36x128xf32, #tpu.memory_space<vmem>>, vector<36x128xf32>
      %cst = arith.constant dense<0.000000e+00> : vector<256x128xf32>
      %11 = tpu.matmul %9, %10, %cst {dimension_numbers = #tpu.dot_dimension_numbers<[1], [0], [0], [1], [0, 0, 1, 1], [], []>} : vector<256x36xf32>, vector<36x128xf32>, vector<256x128xf32> -> vector<256x128xf32>
      %12 = arith.index_cast %arg1 : i32 to index
      %c0_7 = arith.constant 0 : index
      %c0_8 = arith.constant 0 : index
      %13 = vector.load %arg7[%12, %c0_7, %c0_8] : memref<2x256x128xf32, #tpu.memory_space<vmem>>, vector<1x256x128xf32>
      %14 = vector.shape_cast %13 : vector<1x256x128xf32> to vector<256x128xf32>
      %15 = vector.shape_cast %11 : vector<256x128xf32> to vector<1x256x128xf32>
      tpu.vector_store %arg7[%12, %c0_7, %c0_8], %15 {strides = array<i32>} : memref<2x256x128xf32, #tpu.memory_space<vmem>>, vector<1x256x128xf32>,
      %c0_9 = arith.constant 0 : index
      %c0_10 = arith.constant 0 : index
      %16 = vector.load %arg8[%c0_9, %c0_10] : memref<1x128xf32, #tpu.memory_space<vmem>>, vector<1x128xf32>
      %cst_11 = arith.constant dense<0.000000e+00> : vector<128xf32>
      %17 = vector.multi_reduction <add>, %11, %cst_11 [0] : vector<256x128xf32> to vector<128xf32>
      %18 = vector.shape_cast %17 : vector<128xf32> to vector<1x128xf32>
      %19 = arith.addf %16, %18 : vector<1x128xf32>
      %c0_12 = arith.constant 0 : index
      %c0_13 = arith.constant 0 : index
      %20 = vector.load %arg8[%c0_12, %c0_13] : memref<1x128xf32, #tpu.memory_space<vmem>>, vector<1x128xf32>
      tpu.vector_store %arg8[%c0_12, %c0_13], %19 {strides = array<i32>} : memref<1x128xf32, #tpu.memory_space<vmem>>, vector<1x128xf32>,
      %c0_14 = arith.constant 0 : index
      %c0_15 = arith.constant 0 : index
      %21 = vector.load %arg9[%c0_14, %c0_15] : memref<1x128xf32, #tpu.memory_space<vmem>>, vector<1x128xf32>
      %22 = arith.mulf %11, %11 : vector<256x128xf32>
      %cst_16 = arith.constant dense<0.000000e+00> : vector<128xf32>
      %23 = vector.multi_reduction <add>, %22, %cst_16 [0] : vector<256x128xf32> to vector<128xf32>
      %24 = vector.shape_cast %23 : vector<128xf32> to vector<1x128xf32>
      %25 = arith.addf %21, %24 : vector<1x128xf32>
      %c0_17 = arith.constant 0 : index
      %c0_18 = arith.constant 0 : index
      %26 = vector.load %arg9[%c0_17, %c0_18] : memref<1x128xf32, #tpu.memory_space<vmem>>, vector<1x128xf32>
      tpu.vector_store %arg9[%c0_17, %c0_18], %25 {strides = array<i32>} : memref<1x128xf32, #tpu.memory_space<vmem>>, vector<1x128xf32>,
    } else {
    }
    %c1_i32 = arith.constant 1 : i32
    %3 = arith.cmpi eq, %arg0, %c1_i32 : i32
    %4 = arith.extui %3 : i1 to i32
    %c0_i32_1 = arith.constant 0 : i32
    %5 = arith.cmpi ne, %4, %c0_i32_1 : i32
    scf.if %5 {
      %c0_i32_2 = arith.constant 0 : i32
      %6 = arith.cmpi eq, %arg1, %c0_i32_2 : i32
      %7 = arith.extui %6 : i1 to i32
      %c0_i32_3 = arith.constant 0 : i32
      %8 = arith.cmpi ne, %7, %c0_i32_3 : i32
      scf.if %8 {
        %c0_11 = arith.constant 0 : index
        %c0_12 = arith.constant 0 : index
        %21 = vector.load %arg8[%c0_11, %c0_12] : memref<1x128xf32, #tpu.memory_space<vmem>>, vector<1x128xf32>
        %cst_13 = arith.constant 0.001953125 : f32
        %22 = vector.broadcast %cst_13 : f32 to vector<1x128xf32>
        %23 = arith.mulf %21, %22 : vector<1x128xf32>
        %c0_14 = arith.constant 0 : index
        %c0_15 = arith.constant 0 : index
        %24 = vector.load %arg9[%c0_14, %c0_15] : memref<1x128xf32, #tpu.memory_space<vmem>>, vector<1x128xf32>
        %cst_16 = arith.constant 0.001953125 : f32
        %25 = vector.broadcast %cst_16 : f32 to vector<1x128xf32>
        %26 = arith.mulf %24, %25 : vector<1x128xf32>
        %27 = arith.mulf %23, %23 : vector<1x128xf32>
        %28 = arith.subf %26, %27 : vector<1x128xf32>
        %cst_17 = arith.constant 0.000000e+00 : f32
        %29 = vector.broadcast %cst_17 : f32 to vector<1x128xf32>
        %30 = arith.maximumf %28, %29 : vector<1x128xf32>
        %cst_18 = arith.constant 9.99999974E-6 : f32
        %31 = vector.broadcast %cst_18 : f32 to vector<1x128xf32>
        %32 = arith.addf %30, %31 : vector<1x128xf32>
        %33 = math.rsqrt %32 : vector<1x128xf32>
        %c0_19 = arith.constant 0 : index
        %c0_20 = arith.constant 0 : index
        %34 = vector.load %arg4[%c0_19, %c0_20] : memref<1x128xf32, #tpu.memory_space<vmem>>, vector<1x128xf32>
        %35 = arith.mulf %34, %33 : vector<1x128xf32>
        %c0_21 = arith.constant 0 : index
        %c0_22 = arith.constant 0 : index
        %36 = vector.load %arg10[%c0_21, %c0_22] : memref<1x128xf32, #tpu.memory_space<vmem>>, vector<1x128xf32>
        tpu.vector_store %arg10[%c0_21, %c0_22], %35 {strides = array<i32>} : memref<1x128xf32, #tpu.memory_space<vmem>>, vector<1x128xf32>,
        %c0_23 = arith.constant 0 : index
        %c0_24 = arith.constant 0 : index
        %37 = vector.load %arg5[%c0_23, %c0_24] : memref<1x128xf32, #tpu.memory_space<vmem>>, vector<1x128xf32>
        %38 = arith.mulf %23, %35 : vector<1x128xf32>
        %39 = arith.subf %37, %38 : vector<1x128xf32>
        %c0_25 = arith.constant 0 : index
        %c0_26 = arith.constant 0 : index
        %40 = vector.load %arg11[%c0_25, %c0_26] : memref<1x128xf32, #tpu.memory_space<vmem>>, vector<1x128xf32>
        tpu.vector_store %arg11[%c0_25, %c0_26], %39 {strides = array<i32>} : memref<1x128xf32, #tpu.memory_space<vmem>>, vector<1x128xf32>,
      } else {
      }
      %9 = arith.index_cast %arg1 : i32 to index
      %c0 = arith.constant 0 : index
      %c0_4 = arith.constant 0 : index
      %10 = vector.load %arg7[%9, %c0, %c0_4] : memref<2x256x128xf32, #tpu.memory_space<vmem>>, vector<1x256x128xf32>
      %11 = vector.shape_cast %10 : vector<1x256x128xf32> to vector<256x128xf32>
      %c0_5 = arith.constant 0 : index
      %c0_6 = arith.constant 0 : index
      %12 = vector.load %arg10[%c0_5, %c0_6] : memref<1x128xf32, #tpu.memory_space<vmem>>, vector<1x128xf32>
      %13 = vector.broadcast %12 : vector<1x128xf32> to vector<256x128xf32>
      %14 = arith.mulf %11, %13 : vector<256x128xf32>
      %c0_7 = arith.constant 0 : index
      %c0_8 = arith.constant 0 : index
      %15 = vector.load %arg11[%c0_7, %c0_8] : memref<1x128xf32, #tpu.memory_space<vmem>>, vector<1x128xf32>
      %16 = vector.broadcast %15 : vector<1x128xf32> to vector<256x128xf32>
      %17 = arith.addf %14, %16 : vector<256x128xf32>
      %cst = arith.constant 0.000000e+00 : f32
      %18 = vector.broadcast %cst : f32 to vector<256x128xf32>
      %19 = arith.maximumf %17, %18 : vector<256x128xf32>
      %c0_9 = arith.constant 0 : index
      %c0_10 = arith.constant 0 : index
      %20 = vector.load %arg6[%c0_9, %c0_10] : memref<256x128xf32, #tpu.memory_space<vmem>>, vector<256x128xf32>
      tpu.vector_store %arg6[%c0_9, %c0_10], %19 {strides = array<i32>} : memref<256x128xf32, #tpu.memory_space<vmem>>, vector<256x128xf32>,
    } else {
    }
    return
  }
  func.func @transform_0(%arg0: i32, %arg1: i32) -> (i32, i32) {
    %c1_i32 = arith.constant 1 : i32
    %0 = arith.subi %c1_i32, %arg0 : i32
    %1 = arith.muli %0, %arg1 : i32
    %c1_i32_0 = arith.constant 1 : i32
    %2 = arith.muli %arg0, %c1_i32_0 : i32
    %3 = arith.addi %1, %2 : i32
    %c0_i32 = arith.constant 0 : i32
    %c0_i32_1 = arith.constant 0 : i32
    return %3, %c0_i32 : i32, i32
  }
  func.func @transform_1(%arg0: i32, %arg1: i32) -> (i32, i32) {
    %c0_i32 = arith.constant 0 : i32
    %c0_i32_0 = arith.constant 0 : i32
    %c0_i32_1 = arith.constant 0 : i32
    return %c0_i32, %c0_i32_0 : i32, i32
  }
  func.func @transform_2(%arg0: i32, %arg1: i32) -> (i32, i32) {
    %c0_i32 = arith.constant 0 : i32
    %c0_i32_0 = arith.constant 0 : i32
    %c0_i32_1 = arith.constant 0 : i32
    return %c0_i32, %c0_i32_0 : i32, i32
  }
  func.func @transform_3(%arg0: i32, %arg1: i32) -> (i32, i32) {
    %c0_i32 = arith.constant 0 : i32
    %c0_i32_0 = arith.constant 0 : i32
    %c0_i32_1 = arith.constant 0 : i32
    return %c0_i32, %c0_i32_0 : i32, i32
  }
  func.func @transform_4(%arg0: i32, %arg1: i32) -> (i32, i32) {
    %0 = arith.muli %arg0, %arg1 : i32
    %c0_i32 = arith.constant 0 : i32
    %c0_i32_0 = arith.constant 0 : i32
    return %0, %c0_i32 : i32, i32
  }
}

</mosaic_0001>

<bundles_post_ra>
// kernel: tpu_custom_call.1
= control target key start
LH: loop header
LB: loop body
LE: loop exit
PB: predicated region body
PF: predicated region fallthrough
CT: control target
= control target key end

     0   :  { %9 = vsyncpa [#allocation8], 0  ;;  %s1706_s0 = inlined_call_operand.vmem [shape: f32[512,36], index: 0, kind: input, shape index: {}]   ;;  %s1707_s1 = inlined_call_operand.vmem [shape: f32[36,128], index: 1, kind: input, shape index: {}]   ;;  %s1708_s2 = inlined_call_operand.vmem [shape: f32[1,128], index: 2, kind: input, shape index: {}]   ;;  %s1709_s3 = inlined_call_operand.vmem [shape: f32[1,128], index: 3, kind: input, shape index: {}]   ;;  %s1710_s4 = inlined_call_operand.hbm [shape: f32[512,128], index: 4, kind: output, shape index: {}]  }
   0x1   :  { %11 = vsyncpa [#allocation8 + $0x1], 0  ;;  %s1209_s15 = smov 0   ;;  %s1211_s16 = smov 0  }
   0x2   :  { %s1213_s17 = smov 0   ;;  %s1215_s18 = smov 0  }
   0x3   :  { %s1217_s19 = smov 0   ;;  %s1219_s20 = smov 0  }
   0x4   :  { %s1221_s21 = smov 0   ;;  %s1223_s22 = smov 0  }
   0x5 LB: > { %s939_s23 = sadd.s32 4294967295, %s1179_s22   ;;  %s940_s24 = sadd.s32 4294967294, %s1179_s22   ;;  %s1179_s22 = sphi %s1223_s22, %s17_s22   ;;  %s1175_s21 = sphi %s1221_s21, %s1719_s21   ;;  %s1171_s20 = sphi %s1219_s20, %s1718_s20   ;;  %s1167_s19 = sphi %s1217_s19, %s1717_s19   ;;  %s1163_s18 = sphi %s1215_s18, %s1716_s18   ;;  %s1159_s17 = sphi %s1213_s17, %s1715_s17   ;;  %s1155_s16 = sphi %s1211_s16, %s1714_s16   ;;  %s1151_s15 = sphi %s1209_s15, %s1713_s15  }
   0x6   : > { %s26_s25 = sadd.s32 1, %s1171_s20  ;;  %s29_s26 = sadd.s32 1, %s1175_s21 }
   0x7   : > { %p27_p0 = scmp.ge.s32.totalorder %s26_s25, 2  ;;  %s128_s27 = smul.u32 %s1171_s20, %s1175_s21 }
   0x8   : > { %p143_p1 = scmp.ne.s32.totalorder %s1159_s17, %s1155_s16  ;;  %p144_p2 = scmp.eq.s32.totalorder %s939_s23, 3 }
   0x9   : > { %s1721_s25 = smov (%p27_p0, %s26_s25), 0  ;;  %s1723_s26 = smov (!%p27_p0, %s29_s26), %s1175_s21 }
   0xa   : > { %p149_p3 = scmp.ne.s32.totalorder %s1155_s16, %s1151_s15  ;;  %p31_p4 = scmp.ge.s32.totalorder %s1723_s26, 2 }
   0xb   : > { %p150_p5 = scmp.eq.s32.totalorder %s940_s24, 3  ;;  %p1262_p6 = por %p144_p2, %p143_p1 }
   0xc   : > { %p943_p7 = scmp.ge.s32.totalorder %s1179_s22, 1  ;;  %s1725_s26 = smov (%p31_p4, %s1723_s26), 0 }
   0xd   : > { %p1269_p8 = por %p150_p5, %p149_p3  ;;  %p192_p9 = scmp.lt.s32.totalorder %s1179_s22, 5 }
   0xe   : > { %s129_s30 = smul.u32 %s1725_s26, %s1721_s25  ;;  %s133_s6 = sadd.s32 1, %s1159_s17 }
   0xf   : > { %p193_p10 = pnand %p943_p7, %p192_p9 }
  0x10   : > { %s130_s5 = ssub.s32 %s128_s27, %s129_s30  ;;  %s218_s8 = sand.u32 (!%p193_p10), 1, %s1155_s16  }
  0x11   : > { %p131_p11 = scmp.eq.s32.totalorder %s130_s5, 0  ;;  %196 = sbr.rel (%p193_p10) target bundleno = 405 (0x195), region = 36 }
  0x12   : > { %s221_s9 = ssub.s32 (!%p193_p10), 1, %s1167_s19  ;;  %s944_s10 = sshll.u32 (!%p193_p10), %s218_s8, 8 }
  0x13   : > { %s1278_s7 = scalar_select %p131_p11, %s1159_s17, %s133_s6  }
  0x14   : > { %s222_s11 = smul.u32 (!%p193_p10), %s1163_s18, %s221_s9  ;;  %s1291_s30 = scalar_lea.vmem (!%p193_p10), [#allocation7], %s944_s10 }
  0x15   : > { %p947_p13 = scmp.ne.s32.totalorder (!%p193_p10), %s1167_s19, 0 }
  0x16   : > { %s223_s12 = sadd.s32 %s1167_s19, %s222_s11  ;;  %p948_p0 = scmp.ne.s32.totalorder (!%p947_p13), %s1163_s18, 0 }
  0x17   : > { %s945_s13 = sshll.u32 %s223_s12, 5 }
  0x18   : > { %p225_p12 = scmp.lt.s32.totalorder %s945_s13, 63  ;;  %238 = sbr.rel (%p947_p13) target bundleno = 296 (0x128), region = 40 }
  0x1a   : > { %s1727_s13 = smov (!%p225_p12, %s945_s13), 63 }
  0x1b   : > { %s946_s14 = sshll.u32 %s1727_s13, 3 }
  0x1c   : > { %s1289_s27 = scalar_lea.vmem %s1706_s0, %s946_s14 }
  0x1d   : > { %242 = sbr.rel (%p948_p0) target bundleno = 37 (0x25), region = 44 }
  0x22   : > { %v1181_v0 = vmov 0.0  }
  0x23   : > { %243 = vst [vmem:[#allocation3] sm:$0x1] %v1181_v0 }
  0x24   : > { %244 = vst [vmem:[#allocation4] sm:$0x1] %v1181_v0 }
  0x25 PF: > { %v281_v1 = vld [vmem:[%s1707_s1 + $0x20] sm:$0xf]  ;;  %vm379_vm0 = vcmask 1043456   ;;  %v280_v2 = vld [vmem:[%s1707_s1 + $0x18] sm:$0xff]  ;;  %v279_v3 = vld [vmem:[%s1707_s1 + $0x10] sm:$0xff]  ;;  %vm282_vm1 = vcmask 293888  }
  0x26   : > { %949 = vmatpush.msk.msra.mxu0 %vm379_vm0, %v281_v1  ;;  %992 = vmatpush.msk.msra.mxu1 %vm379_vm0, %v281_v1  ;;  %v278_v4 = vld [vmem:[%s1707_s1 + $0x8] sm:$0xff]  ;;  %v277_v5 = vld [vmem:[%s1707_s1] sm:$0xff]  ;;  %v247_v13 = vld [vmem:[%s1289_s27 + $0x10] sm:$0xff]  ;;  %s982_s5 = sshll.u32 %s1163_s18, 8 }
  0x27   : > { %993 = vmatpush.msk.msra.mxu2 %vm379_vm0, %v281_v1  ;;  %994 = vmatpush.msk.msra.mxu3 %vm379_vm0, %v281_v1  ;;  %v245_v6 = vld [vmem:[%s1289_s27] sm:$0xff]  ;;  %v246_v9 = vld [vmem:[%s1289_s27 + $0x8] sm:$0xff]  ;;  %v255_v14 = vld [vmem:[%s1289_s27 + $0x50] sm:$0xff]  ;;  %s1377_s6 = scalar_lea.vmem [#allocation2], %s982_s5 }
  0x28   : > { %395 = vmatpush.msra.mxu0 %v280_v2  ;;  %995 = vmatpush.msra.mxu1 %v280_v2  ;;  %v253_v7 = vld [vmem:[%s1289_s27 + $0x40] sm:$0xff]  ;;  %v254_v10 = vld [vmem:[%s1289_s27 + $0x48] sm:$0xff]  ;;  %v263_v15 = vld [vmem:[%s1289_s27 + $0x90] sm:$0xff] }
  0x29   : > { %996 = vmatpush.msra.mxu2 %v280_v2  ;;  %997 = vmatpush.msra.mxu3 %v280_v2  ;;  %v261_v8 = vld [vmem:[%s1289_s27 + $0x80] sm:$0xff]  ;;  %v262_v11 = vld [vmem:[%s1289_s27 + $0x88] sm:$0xff]  ;;  %v248_v17 = vld [vmem:[%s1289_s27 + $0x18] sm:$0xff] }
  0x2a   : > { %396 = vmatpush.msra.mxu0 %v279_v3  ;;  %998 = vmatpush.msra.mxu1 %v279_v3  ;;  %v269_v12 = vld [vmem:[%s1289_s27 + $0xc0] sm:$0xff]  ;;  %v270_v16 = vld [vmem:[%s1289_s27 + $0xc8] sm:$0xff]  ;;  %v256_v18 = vld [vmem:[%s1289_s27 + $0x58] sm:$0xff] }
  0x2b   : > { %999 = vmatpush.msra.mxu2 %v279_v3  ;;  %1000 = vmatpush.msra.mxu3 %v279_v3  ;;  %v264_v19 = vld [vmem:[%s1289_s27 + $0x98] sm:$0xff]  ;;  %v271_v20 = vld [vmem:[%s1289_s27 + $0xd0] sm:$0xff]  ;;  %v249_v21 = vld [vmem:[%s1289_s27 + $0x20] sm:$0xff] }
  0x2c   : > { %397 = vmatpush.msra.mxu0 %v278_v4  ;;  %1001 = vmatpush.msra.mxu1 %v278_v4  ;;  %v257_v22 = vld [vmem:[%s1289_s27 + $0x60] sm:$0xff]  ;;  %v272_v23 = vld [vmem:[%s1289_s27 + $0xd8] sm:$0xff]  ;;  %v250_v25 = vld [vmem:[%s1289_s27 + $0x28] sm:$0xff] }
  0x2d   : > { %1002 = vmatpush.msra.mxu2 %v278_v4  ;;  %1003 = vmatpush.msra.mxu3 %v278_v4  ;;  %v265_v24 = vld [vmem:[%s1289_s27 + $0xa0] sm:$0xff]  ;;  %v258_v26 = vld [vmem:[%s1289_s27 + $0x68] sm:$0xff]  ;;  %v251_v29 = vld [vmem:[%s1289_s27 + $0x30] sm:$0xff] }
  0x2e   : > { %398 = vmatpush.msra.mxu0 %v277_v5  ;;  %1004 = vmatpush.msra.mxu1 %v277_v5  ;;  %v273_v27 = vld [vmem:[%s1289_s27 + $0xe0] sm:$0xff]  ;;  %v266_v28 = vld [vmem:[%s1289_s27 + $0xa8] sm:$0xff]  ;;  %v259_v30 = vld [vmem:[%s1289_s27 + $0x70] sm:$0xff] }
  0x2f   : > { %950 = vmatmul.msk.f32.vlgmr.msra.gmra.mxu0 %vm282_vm1, %v245_v6  ;;  %958 = vmatmul.msk.f32.vlgmr.msra.gmra.mxu1 %vm282_vm1, %v253_v7  ;;  %v274_v31 = vld [vmem:[%s1289_s27 + $0xe8] sm:$0xff]  ;;  %v267_v32 = vld [vmem:[%s1289_s27 + $0xb0] sm:$0xff]  ;;  %v252_v33 = vld [vmem:[%s1289_s27 + $0x38] sm:$0xff] }
  0x30   : > { %1005 = vmatpush.msra.mxu2 %v277_v5  ;;  %1006 = vmatpush.msra.mxu3 %v277_v5  ;;  %v260_v34 = vld [vmem:[%s1289_s27 + $0x78] sm:$0xff]  ;;  %v275_v35 = vld [vmem:[%s1289_s27 + $0xf0] sm:$0xff] }
  0x31   : > { %966 = vmatmul.msk.f32.vlgmr.msra.gmra.mxu2 %vm282_vm1, %v261_v8  ;;  %974 = vmatmul.msk.f32.vlgmr.msra.gmra.mxu3 %vm282_vm1, %v269_v12  ;;  %v268_v36 = vld [vmem:[%s1289_s27 + $0xb8] sm:$0xff] }
  0x32   : > { %v276_v37 = vld [vmem:[%s1289_s27 + $0xf8] sm:$0xff] }
  0x37   : > { %951 = vmatmul.msk.f32.gmra.mxu0 %vm282_vm1, %v246_v9  ;;  %959 = vmatmul.msk.f32.gmra.mxu1 %vm282_vm1, %v254_v10 }
  0x39   : > { %967 = vmatmul.msk.f32.gmra.mxu2 %vm282_vm1, %v262_v11  ;;  %975 = vmatmul.msk.f32.gmra.mxu3 %vm282_vm1, %v270_v16 }
  0x3f   : > { %952 = vmatmul.msk.f32.gmra.mxu0 %vm282_vm1, %v247_v13  ;;  %960 = vmatmul.msk.f32.gmra.mxu1 %vm282_vm1, %v255_v14 }
  0x41   : > { %968 = vmatmul.msk.f32.gmra.mxu2 %vm282_vm1, %v263_v15  ;;  %976 = vmatmul.msk.f32.gmra.mxu3 %vm282_vm1, %v271_v20 }
  0x47   : > { %953 = vmatmul.msk.f32.gmra.mxu0 %vm282_vm1, %v248_v17  ;;  %961 = vmatmul.msk.f32.gmra.mxu1 %vm282_vm1, %v256_v18 }
  0x49   : > { %969 = vmatmul.msk.f32.gmra.mxu2 %vm282_vm1, %v264_v19  ;;  %977 = vmatmul.msk.f32.gmra.mxu3 %vm282_vm1, %v272_v23 }
  0x4f   : > { %954 = vmatmul.msk.f32.gmra.mxu0 %vm282_vm1, %v249_v21  ;;  %962 = vmatmul.msk.f32.gmra.mxu1 %vm282_vm1, %v257_v22 }
  0x51   : > { %970 = vmatmul.msk.f32.gmra.mxu2 %vm282_vm1, %v265_v24  ;;  %978 = vmatmul.msk.f32.gmra.mxu3 %vm282_vm1, %v273_v27 }
  0x57   : > { %955 = vmatmul.msk.f32.gmra.mxu0 %vm282_vm1, %v250_v25  ;;  %963 = vmatmul.msk.f32.gmra.mxu1 %vm282_vm1, %v258_v26 }
  0x59   : > { %971 = vmatmul.msk.f32.gmra.mxu2 %vm282_vm1, %v266_v28  ;;  %979 = vmatmul.msk.f32.gmra.mxu3 %vm282_vm1, %v274_v31 }
  0x5f   : > { %956 = vmatmul.msk.f32.gmra.mxu0 %vm282_vm1, %v251_v29  ;;  %964 = vmatmul.msk.f32.gmra.mxu1 %vm282_vm1, %v259_v30 }
  0x61   : > { %972 = vmatmul.msk.f32.gmra.mxu2 %vm282_vm1, %v267_v32  ;;  %980 = vmatmul.msk.f32.gmra.mxu3 %vm282_vm1, %v275_v35 }
  0x67   : > { %957 = vmatmul.msk.f32.gmra.mxu0 %vm282_vm1, %v252_v33  ;;  %965 = vmatmul.msk.f32.gmra.mxu1 %vm282_vm1, %v260_v34 }
  0x69   : > { %973 = vmatmul.msk.f32.gmra.mxu2 %vm282_vm1, %v268_v36  ;;  %981 = vmatmul.msk.f32.gmra.mxu3 %vm282_vm1, %v276_v37 }
  0xac   : > { %v400_v38 = vpop.f32.mrf.mxu0  ;;  %v1375_v39 = vpop.f32.mrf.mxu1 }
  0xad   : > { %498 = vst [vmem:[%s1377_s6] sm:$0xff] %v400_v38  ;;  %v571_v60 = vmul.f32 %v400_v38, %v400_v38  ;;  %v579_v24 = vmul.f32 %v1375_v39, %v1375_v39 }
  0xae   : > { %506 = vst [vmem:[%s1377_s6 + $0x40] sm:$0xff] %v1375_v39 }
  0xb4   : > { %v403_v40 = vpop.f32.mrf.mxu0  ;;  %v1382_v41 = vpop.f32.mrf.mxu1 }
  0xb5   : > { %499 = vst [vmem:[%s1377_s6 + $0x8] sm:$0xff] %v403_v40  ;;  %v1385_v42 = vpop.f32.mrf.mxu2  ;;  %v1396_v46 = vpop.f32.mrf.mxu3  ;;  %v572_v59 = vmul.f32 %v403_v40, %v403_v40  ;;  %v531_v61 = vadd.f32 %v403_v40, %v400_v38  ;;  %v580_v27 = vmul.f32 %v1382_v41, %v1382_v41 }
  0xb6   : > { %507 = vst [vmem:[%s1377_s6 + $0x48] sm:$0xff] %v1382_v41 }
  0xb7   : > { %514 = vst [vmem:[%s1377_s6 + $0x80] sm:$0xff] %v1385_v42  ;;  %v603_v63 = vadd.f32 %v572_v59, %v571_v60 }
  0xb8   : > { %522 = vst [vmem:[%s1377_s6 + $0xc0] sm:$0xff] %v1396_v46 }
  0xbc   : > { %v406_v43 = vpop.f32.mrf.mxu0  ;;  %v1391_v44 = vpop.f32.mrf.mxu1 }
  0xbd   : > { %500 = vst [vmem:[%s1377_s6 + $0x10] sm:$0xff] %v406_v43  ;;  %v1394_v45 = vpop.f32.mrf.mxu2  ;;  %v1409_v50 = vpop.f32.mrf.mxu3  ;;  %v573_v62 = vmul.f32 %v406_v43, %v406_v43  ;;  %v532_v0 = vadd.f32 %v531_v61, %v406_v43  ;;  %v581_v30 = vmul.f32 %v1391_v44, %v1391_v44 }
  0xbe   : > { %508 = vst [vmem:[%s1377_s6 + $0x50] sm:$0xff] %v1391_v44 }
  0xbf   : > { %515 = vst [vmem:[%s1377_s6 + $0x88] sm:$0xff] %v1394_v45  ;;  %v604_v4 = vadd.f32 %v603_v63, %v573_v62  ;;  %v587_v62 = vmul.f32 %v1385_v42, %v1385_v42 }
  0xc0   : > { %523 = vst [vmem:[%s1377_s6 + $0xc8] sm:$0xff] %v1409_v50 }
  0xc4   : > { %v409_v47 = vpop.f32.mrf.mxu0  ;;  %v1404_v48 = vpop.f32.mrf.mxu1 }
  0xc5   : > { %501 = vst [vmem:[%s1377_s6 + $0x18] sm:$0xff] %v409_v47  ;;  %v1407_v49 = vpop.f32.mrf.mxu2  ;;  %v1422_v54 = vpop.f32.mrf.mxu3  ;;  %v574_v1 = vmul.f32 %v409_v47, %v409_v47  ;;  %v533_v5 = vadd.f32 %v532_v0, %v409_v47  ;;  %v582_v33 = vmul.f32 %v1404_v48, %v1404_v48  ;;  %v588_v0 = vmul.f32 %v1394_v45, %v1394_v45 }
  0xc6   : > { %509 = vst [vmem:[%s1377_s6 + $0x58] sm:$0xff] %v1404_v48 }
  0xc7   : > { %516 = vst [vmem:[%s1377_s6 + $0x90] sm:$0xff] %v1407_v49  ;;  %v605_v9 = vadd.f32 %v604_v4, %v574_v1 }
  0xc8   : > { %524 = vst [vmem:[%s1377_s6 + $0xd0] sm:$0xff] %v1422_v54 }
  0xcc   : > { %v412_v51 = vpop.f32.mrf.mxu0  ;;  %v1417_v52 = vpop.f32.mrf.mxu1 }
  0xcd   : > { %502 = vst [vmem:[%s1377_s6 + $0x20] sm:$0xff] %v412_v51  ;;  %v1420_v53 = vpop.f32.mrf.mxu2  ;;  %v1435_v58 = vpop.f32.mrf.mxu3  ;;  %v575_v6 = vmul.f32 %v412_v51, %v412_v51  ;;  %v534_v10 = vadd.f32 %v533_v5, %v412_v51  ;;  %v583_v38 = vmul.f32 %v1417_v52, %v1417_v52 }
  0xce   : > { %510 = vst [vmem:[%s1377_s6 + $0x60] sm:$0xff] %v1417_v52  ;;  %v590_v5 = vmul.f32 %v1420_v53, %v1420_v53 }
  0xcf   : > { %517 = vst [vmem:[%s1377_s6 + $0x98] sm:$0xff] %v1420_v53  ;;  %v606_v12 = vadd.f32 %v605_v9, %v575_v6 }
  0xd0   : > { %525 = vst [vmem:[%s1377_s6 + $0xd8] sm:$0xff] %v1435_v58 }
  0xd4   : > { %v415_v55 = vpop.f32.mrf.mxu0  ;;  %v1430_v56 = vpop.f32.mrf.mxu1 }
  0xd5   : > { %503 = vst [vmem:[%s1377_s6 + $0x28] sm:$0xff] %v415_v55  ;;  %v1433_v57 = vpop.f32.mrf.mxu2  ;;  %v1446_v8 = vpop.f32.mrf.mxu3  ;;  %v576_v11 = vmul.f32 %v415_v55, %v415_v55  ;;  %v535_v13 = vadd.f32 %v534_v10, %v415_v55  ;;  %v584_v43 = vmul.f32 %v1430_v56, %v1430_v56 }
  0xd6   : > { %511 = vst [vmem:[%s1377_s6 + $0x68] sm:$0xff] %v1430_v56 }
  0xd7   : > { %518 = vst [vmem:[%s1377_s6 + $0xa0] sm:$0xff] %v1433_v57  ;;  %v607_v15 = vadd.f32 %v606_v12, %v576_v11 }
  0xd8   : > { %526 = vst [vmem:[%s1377_s6 + $0xe0] sm:$0xff] %v1446_v8 }
  0xdc   : > { %v418_v2 = vpop.f32.mrf.mxu0  ;;  %v442_v3 = vpop.f32.mrf.mxu1 }
  0xdd   : > { %504 = vst [vmem:[%s1377_s6 + $0x30] sm:$0xff] %v418_v2  ;;  %v1444_v7 = vpop.f32.mrf.mxu2  ;;  %v577_v14 = vmul.f32 %v418_v2, %v418_v2  ;;  %v536_v16 = vadd.f32 %v535_v13, %v418_v2  ;;  %v1454_v23 = vpop.f32.mrf.mxu3  ;;  %v589_v2 = vmul.f32 %v1407_v49, %v1407_v49 }
  0xde   : > { %512 = vst [vmem:[%s1377_s6 + $0x70] sm:$0xff] %v442_v3  ;;  %v592_v12 = vmul.f32 %v1444_v7, %v1444_v7 }
  0xdf   : > { %519 = vst [vmem:[%s1377_s6 + $0xa8] sm:$0xff] %v1444_v7  ;;  %v608_v19 = vadd.f32 %v607_v15, %v577_v14 }
  0xe0   : > { %527 = vst [vmem:[%s1377_s6 + $0xe8] sm:$0xff] %v1454_v23 }
  0xe4   : > { %v421_v17 = vpop.f32.mrf.mxu0  ;;  %v445_v18 = vpop.f32.mrf.mxu1 }
  0xe5   : > { %505 = vst [vmem:[%s1377_s6 + $0x38] sm:$0xff] %v421_v17  ;;  %v537_v20 = vadd.f32 %v536_v16, %v421_v17  ;;  %v578_v21 = vmul.f32 %v421_v17, %v421_v17  ;;  %v466_v22 = vpop.f32.mrf.mxu2  ;;  %v490_v37 = vpop.f32.mrf.mxu3  ;;  %v586_v55 = vmul.f32 %v445_v18, %v445_v18 }
  0xe6   : > { %513 = vst [vmem:[%s1377_s6 + $0x78] sm:$0xff] %v445_v18  ;;  %v593_v15 = vmul.f32 %v466_v22, %v466_v22 }
  0xe7   : > { %v538_v25 = vadd.f32 %v537_v20, %v1375_v39  ;;  %v609_v26 = vadd.f32 %v608_v19, %v578_v21  ;;  %520 = vst [vmem:[%s1377_s6 + $0xb0] sm:$0xff] %v466_v22 }
  0xe8   : > { %528 = vst [vmem:[%s1377_s6 + $0xf0] sm:$0xff] %v490_v37 }
  0xe9   : > { %v539_v28 = vadd.f32 %v538_v25, %v1382_v41  ;;  %v610_v29 = vadd.f32 %v609_v26, %v579_v24  ;;  %v598_v26 = vmul.f32 %v1435_v58, %v1435_v58 }
  0xeb   : > { %v540_v31 = vadd.f32 %v539_v28, %v1391_v44  ;;  %v611_v32 = vadd.f32 %v610_v29, %v580_v27 }
  0xed   : > { %v612_v34 = vadd.f32 %v611_v32, %v581_v30  ;;  %v541_v35 = vadd.f32 %v540_v31, %v1404_v48  ;;  %v469_v36 = vpop.f32.mrf.mxu2  ;;  %v585_v48 = vmul.f32 %v442_v3, %v442_v3  ;;  %v493_v61 = vpop.f32.mrf.mxu3  ;;  %v600_v31 = vmul.f32 %v1454_v23, %v1454_v23 }
  0xee   : > { %521 = vst [vmem:[%s1377_s6 + $0xb8] sm:$0xff] %v469_v36  ;;  %v594_v16 = vmul.f32 %v469_v36, %v469_v36 }
  0xef   : > { %v542_v39 = vadd.f32 %v541_v35, %v1417_v52  ;;  %v613_v40 = vadd.f32 %v612_v34, %v582_v33  ;;  %529 = vst [vmem:[%s1377_s6 + $0xf8] sm:$0xff] %v493_v61  ;;  %v601_v34 = vmul.f32 %v490_v37, %v490_v37  ;;  %v602_v35 = vmul.f32 %v493_v61, %v493_v61 }
  0xf1   : > { %v543_v41 = vadd.f32 %v542_v39, %v1430_v56  ;;  %v614_v44 = vadd.f32 %v613_v40, %v583_v38 }
  0xf3   : > { %v615_v47 = vadd.f32 %v614_v44, %v584_v43  ;;  %v544_v51 = vadd.f32 %v543_v41, %v442_v3 }
  0xf5   : > { %v616_v59 = vadd.f32 %v615_v47, %v585_v48  ;;  %v545_v60 = vadd.f32 %v544_v51, %v445_v18 }
  0xf7   : > { %v546_v52 = vadd.f32 %v545_v60, %v1385_v42  ;;  %v617_v63 = vadd.f32 %v616_v59, %v586_v55  ;;  %v591_v42 = vmul.f32 %v1433_v57, %v1433_v57  ;;  %v530_v55 = vld [vmem:[#allocation3] sm:$0x1]  ;;  %v570_v60 = vld [vmem:[#allocation4] sm:$0x1] }
  0xf9   : > { %v547_v56 = vadd.f32 %v546_v52, %v1394_v45  ;;  %v618_v1 = vadd.f32 %v617_v63, %v587_v62 }
  0xfb   : > { %v548_v3 = vadd.f32 %v547_v56, %v1407_v49  ;;  %v619_v4 = vadd.f32 %v618_v1, %v588_v0 }
  0xfd   : > { %v620_v6 = vadd.f32 %v619_v4, %v589_v2  ;;  %v549_v9 = vadd.f32 %v548_v3, %v1420_v53  ;;  %v595_v53 = vmul.f32 %v1396_v46, %v1396_v46 }
  0xff   : > { %v550_v10 = vadd.f32 %v549_v9, %v1433_v57  ;;  %v621_v11 = vadd.f32 %v620_v6, %v590_v5  ;;  %v596_v57 = vmul.f32 %v1409_v50, %v1409_v50 }
 0x101   : > { %v551_v45 = vadd.f32 %v550_v10, %v1444_v7  ;;  %v622_v13 = vadd.f32 %v621_v11, %v591_v42  ;;  %v597_v7 = vmul.f32 %v1422_v54, %v1422_v54 }
 0x103   : > { %v623_v49 = vadd.f32 %v622_v13, %v592_v12  ;;  %v552_v14 = vadd.f32 %v551_v45, %v466_v22 }
 0x105   : > { %v624_v17 = vadd.f32 %v623_v49, %v593_v15  ;;  %v553_v18 = vadd.f32 %v552_v14, %v469_v36 }
 0x107   : > { %v554_v19 = vadd.f32 %v553_v18, %v1396_v46  ;;  %v625_v20 = vadd.f32 %v624_v17, %v594_v16  ;;  %v599_v46 = vmul.f32 %v1446_v8, %v1446_v8 }
 0x109   : > { %v555_v21 = vadd.f32 %v554_v19, %v1409_v50  ;;  %v626_v24 = vadd.f32 %v625_v20, %v595_v53 }
 0x10b   : > { %v556_v22 = vadd.f32 %v555_v21, %v1422_v54  ;;  %v627_v25 = vadd.f32 %v626_v24, %v596_v57 }
 0x10d   : > { %v628_v27 = vadd.f32 %v627_v25, %v597_v7  ;;  %v557_v28 = vadd.f32 %v556_v22, %v1435_v58 }
 0x10f   : > { %v558_v29 = vadd.f32 %v557_v28, %v1446_v8  ;;  %v629_v30 = vadd.f32 %v628_v27, %v598_v26 }
 0x111   : > { %v559_v50 = vadd.f32 %v558_v29, %v1454_v23  ;;  %v630_v32 = vadd.f32 %v629_v30, %v599_v46 }
 0x113   : > { %v631_v54 = vadd.f32 %v630_v32, %v600_v31  ;;  %v560_v33 = vadd.f32 %v559_v50, %v490_v37 }
 0x115   : > { %v632_v36 = vadd.f32 %v631_v54, %v601_v34  ;;  %v561_v38 = vadd.f32 %v560_v33, %v493_v61 }
 0x117   : > { %v562_v39 = vrot.slane %v561_v38, 4  ;;  %v633_v58 = vadd.f32 %v632_v36, %v602_v35 }
 0x119   : > { %v563_v40 = vadd.f32 %v562_v39, %v561_v38  ;;  %v634_v41 = vrot.slane %v633_v58, 4 }
 0x11b   : > { %v564_v43 = vrot.slane %v563_v40, 2  ;;  %v635_v44 = vadd.f32 %v634_v41, %v633_v58 }
 0x11d   : > { %v565_v8 = vadd.f32 %v564_v43, %v563_v40  ;;  %v636_v47 = vrot.slane %v635_v44, 2 }
 0x11f   : > { %v566_v51 = vrot.slane %v565_v8, 1  ;;  %v637_v48 = vadd.f32 %v636_v47, %v635_v44 }
 0x121   : > { %v567_v59 = vadd.f32 %v566_v51, %v565_v8  ;;  %v638_v23 = vrot.slane %v637_v48, 1 }
 0x123   : > { %v568_v62 = vadd.f32 %v567_v59, %v530_v55  ;;  %v639_v52 = vadd.f32 %v638_v23, %v637_v48 }
 0x125   : > { %569 = vst [vmem:[#allocation3] sm:$0x1] %v568_v62  ;;  %v640_v37 = vadd.f32 %v639_v52, %v570_v60 }
 0x127   : > { %641 = vst [vmem:[#allocation4] sm:$0x1] %v640_v37 }
 0x128 PF: > { %p983_p1 = scmp.ne.s32.totalorder %s1167_s19, 1 }
 0x129   : > { %p984_p2 = scmp.ne.s32.totalorder (!%p983_p1), %s1163_s18, 0 }
 0x12a   : > { %645 = sbr.rel (%p983_p1) target bundleno = 387 (0x183), region = 48 }
 0x12f   : > { %649 = sbr.rel (%p984_p2) target bundleno = 344 (0x158), region = 52 }
 0x134   : > { %v650_v61 = vld [vmem:[#allocation3] sm:$0x1]  ;;  %v652_v63 = vld [vmem:[#allocation4] sm:$0x1] }
 0x135   : > { %v651_v0 = vmul.f32 0.001953125, %v650_v61  ;;  %v653_v56 = vmul.f32 0.001953125, %v652_v63  ;;  %v668_v45 = vld [vmem:[%s1708_s2] sm:$0x1] }
 0x136   : > { %v671_v49 = vld [vmem:[%s1709_s3] sm:$0x1] }
 0x137   : > { %v654_v1 = vmul.f32 %v651_v0, %v651_v0 }
 0x139   : > { %v655_v2 = vsub.f32 %v653_v56, %v654_v1 }
 0x13b   : > { %v656_v3 = vmax.f32 %v655_v2, 0.0 }
 0x13d   : > { %v657_v4 = vadd.f32 1e-05, %v656_v3 }
 0x13f   : > { %1081 = vrsqrt.f32 %v657_v4  ;;  %vm664_vm2 = vweird.f32 %v657_v4 }
 0x145   : > { %v1082_v5 = vpop.eup %1081 }
 0x146   : > { %v659_v6 = vmul.f32 %v1082_v5, %v657_v4  ;;  %vm665_vm3 = vweird.f32 %v1082_v5 }
 0x147   : > { %vm666_vm4 = vmor %vm664_vm2, %vm665_vm3 }
 0x148   : > { %v660_v9 = vmul.f32 %v1082_v5, %v659_v6 }
 0x14a   : > { %v661_v42 = vmul.f32 0.5, %v660_v9 }
 0x14c   : > { %v662_v10 = vsub.f32 1.5, %v661_v42 }
 0x14e   : > { %v663_v11 = vmul.f32 %v1082_v5, %v662_v10 }
 0x150   : > { %v667_v12 = vsel %vm666_vm4, %v1082_v5, %v663_v11 }
 0x151   : > { %v669_v13 = vmul.f32 %v668_v45, %v667_v12 }
 0x153   : > { %670 = vst [vmem:[#allocation5] sm:$0x1] %v669_v13  ;;  %v672_v14 = vmul.f32 %v669_v13, %v651_v0 }
 0x155   : > { %v673_v15 = vsub.f32 %v671_v49, %v672_v14 }
 0x157   : > { %674 = vst [vmem:[#allocation6] sm:$0x1] %v673_v15 }
 0x158 PF: > { %s985_s12 = sshll.u32 %s1163_s18, 8 }
 0x159   : > { %s1530_s13 = scalar_lea.vmem [#allocation2], %s985_s12 }
 0x15a   : > { %v1526_v16 = vld [vmem:[#allocation5] ss:$0 sm:$0xff]  ;;  %v678_v53 = vld [vmem:[%s1530_s13 + $0x8] sm:$0xff]  ;;  %v679_v19 = vld [vmem:[%s1530_s13 + $0x10] sm:$0xff] }
 0x15b   : > { %v677_v18 = vld [vmem:[%s1530_s13] sm:$0xff]  ;;  %v714_v57 = vmul.f32 %v1526_v16, %v678_v53  ;;  %v715_v21 = vmul.f32 %v1526_v16, %v679_v19  ;;  %v680_v24 = vld [vmem:[%s1530_s13 + $0x18] sm:$0xff]  ;;  %v682_v22 = vld [vmem:[%s1530_s13 + $0x28] sm:$0xff] }
 0x15c   : > { %v713_v20 = vmul.f32 %v1526_v16, %v677_v18  ;;  %v681_v7 = vld [vmem:[%s1530_s13 + $0x20] sm:$0xff]  ;;  %v716_v25 = vmul.f32 %v1526_v16, %v680_v24  ;;  %v718_v27 = vmul.f32 %v1526_v16, %v682_v22  ;;  %v683_v28 = vld [vmem:[%s1530_s13 + $0x30] sm:$0xff]  ;;  %v684_v46 = vld [vmem:[%s1530_s13 + $0x38] sm:$0xff] }
 0x15d   : > { %v717_v26 = vmul.f32 %v1526_v16, %v681_v7  ;;  %v719_v31 = vmul.f32 %v1526_v16, %v683_v28  ;;  %v720_v34 = vmul.f32 %v1526_v16, %v684_v46  ;;  %v685_v35 = vld [vmem:[%s1530_s13 + $0x40] sm:$0xff]  ;;  %v686_v36 = vld [vmem:[%s1530_s13 + $0x48] sm:$0xff]  ;;  %v687_v38 = vld [vmem:[%s1530_s13 + $0x50] sm:$0xff] }
 0x15e   : > { %v1528_v17 = vld [vmem:[#allocation6] ss:$0 sm:$0xff]  ;;  %v688_v43 = vld [vmem:[%s1530_s13 + $0x58] sm:$0xff]  ;;  %v690_v8 = vld [vmem:[%s1530_s13 + $0x68] sm:$0xff]  ;;  %v721_v23 = vmul.f32 %v1526_v16, %v685_v35  ;;  %v722_v60 = vmul.f32 %v1526_v16, %v686_v36  ;;  %v723_v62 = vmul.f32 %v1526_v16, %v687_v38 }
 0x15f   : > { %v749_v29 = vadd.f32 %v1528_v17, %v713_v20  ;;  %v750_v30 = vadd.f32 %v1528_v17, %v714_v57  ;;  %v751_v50 = vadd.f32 %v1528_v17, %v715_v21  ;;  %v752_v32 = vadd.f32 %v1528_v17, %v716_v25  ;;  %v689_v44 = vld [vmem:[%s1530_s13 + $0x60] sm:$0xff]  ;;  %v691_v55 = vld [vmem:[%s1530_s13 + $0x70] sm:$0xff]  ;;  %v692_v52 = vld [vmem:[%s1530_s13 + $0x78] sm:$0xff] }
 0x160   : > { %v753_v54 = vadd.f32 %v1528_v17, %v717_v26  ;;  %v754_v33 = vadd.f32 %v1528_v17, %v718_v27  ;;  %v755_v41 = vadd.f32 %v1528_v17, %v719_v31  ;;  %v756_v48 = vadd.f32 %v1528_v17, %v720_v34  ;;  %v693_v9 = vld [vmem:[%s1530_s13 + $0x80] sm:$0xff]  ;;  %v694_v42 = vld [vmem:[%s1530_s13 + $0x88] sm:$0xff]  ;;  %v695_v10 = vld [vmem:[%s1530_s13 + $0x90] sm:$0xff] }
 0x161   : > { %v781_v39 = vmax.f32 %v749_v29, 0.0  ;;  %v782_v58 = vmax.f32 %v750_v30, 0.0  ;;  %v783_v40 = vmax.f32 %v751_v50, 0.0  ;;  %v784_v47 = vmax.f32 %v752_v32, 0.0  ;;  %v696_v12 = vld [vmem:[%s1530_s13 + $0x98] sm:$0xff]  ;;  %v697_v15 = vld [vmem:[%s1530_s13 + $0xa0] sm:$0xff] }
 0x162   : > { %v785_v51 = vmax.f32 %v753_v54, 0.0  ;;  %v786_v59 = vmax.f32 %v754_v33, 0.0  ;;  %v787_v37 = vmax.f32 %v755_v41, 0.0  ;;  %v724_v61 = vmul.f32 %v1526_v16, %v688_v43  ;;  %v698_v57 = vld [vmem:[%s1530_s13 + $0xa8] sm:$0xff]  ;;  %v699_v22 = vld [vmem:[%s1530_s13 + $0xb0] sm:$0xff]  ;;  %v700_v28 = vld [vmem:[%s1530_s13 + $0xb8] sm:$0xff] }
 0x163   : > { %813 = vst [vmem:[%s1291_s30] sm:$0xff] %v781_v39  ;;  %v725_v63 = vmul.f32 %v1526_v16, %v689_v44  ;;  %v726_v0 = vmul.f32 %v1526_v16, %v690_v8  ;;  %v757_v56 = vadd.f32 %v1528_v17, %v721_v23  ;;  %v758_v1 = vadd.f32 %v1528_v17, %v722_v60  ;;  %v701_v50 = vld [vmem:[%s1530_s13 + $0xc0] sm:$0xff]  ;;  %v702_v33 = vld [vmem:[%s1530_s13 + $0xc8] sm:$0xff]  ;;  %v703_v38 = vld [vmem:[%s1530_s13 + $0xd0] sm:$0xff] }
 0x164   : > { %814 = vst [vmem:[%s1291_s30 + $0x8] sm:$0xff] %v782_v58  ;;  %v759_v2 = vadd.f32 %v1528_v17, %v723_v62  ;;  %v727_v3 = vmul.f32 %v1526_v16, %v691_v55  ;;  %v788_v4 = vmax.f32 %v756_v48, 0.0  ;;  %v760_v5 = vadd.f32 %v1528_v17, %v724_v61  ;;  %v704_v41 = vld [vmem:[%s1530_s13 + $0xd8] sm:$0xff] }
 0x165   : > { %815 = vst [vmem:[%s1291_s30 + $0x10] sm:$0xff] %v783_v40  ;;  %v728_v6 = vmul.f32 %v1526_v16, %v692_v52  ;;  %v789_v11 = vmax.f32 %v757_v56, 0.0  ;;  %v761_v45 = vadd.f32 %v1528_v17, %v725_v63  ;;  %v790_v13 = vmax.f32 %v758_v1, 0.0  ;;  %v707_v52 = vld [vmem:[%s1530_s13 + $0xf0] sm:$0xff] }
 0x166   : > { %816 = vst [vmem:[%s1291_s30 + $0x18] sm:$0xff] %v784_v47  ;;  %v791_v49 = vmax.f32 %v759_v2, 0.0  ;;  %v762_v14 = vadd.f32 %v1528_v17, %v726_v0  ;;  %v763_v18 = vadd.f32 %v1528_v17, %v727_v3  ;;  %v729_v53 = vmul.f32 %v1526_v16, %v693_v9  ;;  %v705_v47 = vld [vmem:[%s1530_s13 + $0xe0] sm:$0xff]  ;;  %v708_v0 = vld [vmem:[%s1530_s13 + $0xf8] sm:$0xff] }
 0x167   : > { %817 = vst [vmem:[%s1291_s30 + $0x20] sm:$0xff] %v785_v51  ;;  %v730_v19 = vmul.f32 %v1526_v16, %v694_v42  ;;  %v731_v20 = vmul.f32 %v1526_v16, %v695_v10  ;;  %v792_v21 = vmax.f32 %v760_v5, 0.0  ;;  %v764_v24 = vadd.f32 %v1528_v17, %v728_v6 }
 0x168   : > { %818 = vst [vmem:[%s1291_s30 + $0x28] sm:$0xff] %v786_v59  ;;  %v732_v7 = vmul.f32 %v1526_v16, %v696_v12  ;;  %v793_v25 = vmax.f32 %v761_v45, 0.0  ;;  %v765_v26 = vadd.f32 %v1528_v17, %v729_v53  ;;  %v733_v27 = vmul.f32 %v1526_v16, %v697_v15  ;;  %v706_v59 = vld [vmem:[%s1530_s13 + $0xe8] sm:$0xff] }
 0x169   : > { %819 = vst [vmem:[%s1291_s30 + $0x30] sm:$0xff] %v787_v37  ;;  %v794_v46 = vmax.f32 %v762_v14, 0.0  ;;  %v766_v29 = vadd.f32 %v1528_v17, %v730_v19  ;;  %v734_v30 = vmul.f32 %v1526_v16, %v698_v57  ;;  %v795_v31 = vmax.f32 %v763_v18, 0.0 }
 0x16a   : > { %820 = vst [vmem:[%s1291_s30 + $0x38] sm:$0xff] %v788_v4  ;;  %v767_v32 = vadd.f32 %v1528_v17, %v731_v20  ;;  %v735_v54 = vmul.f32 %v1526_v16, %v699_v22  ;;  %v796_v34 = vmax.f32 %v764_v24, 0.0  ;;  %v768_v35 = vadd.f32 %v1528_v17, %v732_v7 }
 0x16b   : > { %821 = vst [vmem:[%s1291_s30 + $0x40] sm:$0xff] %v789_v11  ;;  %v736_v36 = vmul.f32 %v1526_v16, %v700_v28  ;;  %v797_v39 = vmax.f32 %v765_v26, 0.0  ;;  %v769_v58 = vadd.f32 %v1528_v17, %v733_v27  ;;  %v737_v40 = vmul.f32 %v1526_v16, %v701_v50 }
 0x16c   : > { %822 = vst [vmem:[%s1291_s30 + $0x48] sm:$0xff] %v790_v13  ;;  %v798_v43 = vmax.f32 %v766_v29, 0.0  ;;  %v770_v44 = vadd.f32 %v1528_v17, %v734_v30  ;;  %v738_v8 = vmul.f32 %v1526_v16, %v702_v33  ;;  %v799_v51 = vmax.f32 %v767_v32, 0.0 }
 0x16d   : > { %823 = vst [vmem:[%s1291_s30 + $0x50] sm:$0xff] %v791_v49  ;;  %v771_v48 = vadd.f32 %v1528_v17, %v735_v54  ;;  %v739_v55 = vmul.f32 %v1526_v16, %v703_v38  ;;  %v800_v23 = vmax.f32 %v768_v35, 0.0  ;;  %v772_v60 = vadd.f32 %v1528_v17, %v736_v36 }
 0x16e   : > { %824 = vst [vmem:[%s1291_s30 + $0x58] sm:$0xff] %v792_v21  ;;  %v740_v62 = vmul.f32 %v1526_v16, %v704_v41  ;;  %v801_v37 = vmax.f32 %v769_v58, 0.0  ;;  %v773_v61 = vadd.f32 %v1528_v17, %v737_v40  ;;  %v741_v63 = vmul.f32 %v1526_v16, %v705_v47 }
 0x16f   : > { %825 = vst [vmem:[%s1291_s30 + $0x60] sm:$0xff] %v793_v25  ;;  %v802_v56 = vmax.f32 %v770_v44, 0.0  ;;  %v774_v1 = vadd.f32 %v1528_v17, %v738_v8  ;;  %v742_v2 = vmul.f32 %v1526_v16, %v706_v59  ;;  %v803_v3 = vmax.f32 %v771_v48, 0.0 }
 0x170   : > { %826 = vst [vmem:[%s1291_s30 + $0x68] sm:$0xff] %v794_v46  ;;  %v775_v4 = vadd.f32 %v1528_v17, %v739_v55  ;;  %v743_v5 = vmul.f32 %v1526_v16, %v707_v52  ;;  %v804_v6 = vmax.f32 %v772_v60, 0.0  ;;  %v776_v9 = vadd.f32 %v1528_v17, %v740_v62 }
 0x171   : > { %827 = vst [vmem:[%s1291_s30 + $0x70] sm:$0xff] %v795_v31  ;;  %v744_v42 = vmul.f32 %v1526_v16, %v708_v0  ;;  %v805_v10 = vmax.f32 %v773_v61, 0.0  ;;  %v777_v11 = vadd.f32 %v1528_v17, %v741_v63  ;;  %v806_v45 = vmax.f32 %v774_v1, 0.0 }
 0x172   : > { %828 = vst [vmem:[%s1291_s30 + $0x78] sm:$0xff] %v796_v34  ;;  %v778_v12 = vadd.f32 %v1528_v17, %v742_v2  ;;  %v807_v13 = vmax.f32 %v775_v4, 0.0  ;;  %v779_v49 = vadd.f32 %v1528_v17, %v743_v5  ;;  %v808_v16 = vmax.f32 %v776_v9, 0.0 }
 0x173   : > { %829 = vst [vmem:[%s1291_s30 + $0x80] sm:$0xff] %v797_v39  ;;  %v780_v14 = vadd.f32 %v1528_v17, %v744_v42  ;;  %v809_v15 = vmax.f32 %v777_v11, 0.0 }
 0x174   : > { %830 = vst [vmem:[%s1291_s30 + $0x88] sm:$0xff] %v798_v43  ;;  %v810_v18 = vmax.f32 %v778_v12, 0.0  ;;  %v811_v53 = vmax.f32 %v779_v49, 0.0 }
 0x175   : > { %831 = vst [vmem:[%s1291_s30 + $0x90] sm:$0xff] %v799_v51  ;;  %v812_v19 = vmax.f32 %v780_v14, 0.0 }
 0x176   : > { %832 = vst [vmem:[%s1291_s30 + $0x98] sm:$0xff] %v800_v23 }
 0x177   : > { %833 = vst [vmem:[%s1291_s30 + $0xa0] sm:$0xff] %v801_v37 }
 0x178   : > { %834 = vst [vmem:[%s1291_s30 + $0xa8] sm:$0xff] %v802_v56 }
 0x179   : > { %835 = vst [vmem:[%s1291_s30 + $0xb0] sm:$0xff] %v803_v3 }
 0x17a   : > { %836 = vst [vmem:[%s1291_s30 + $0xb8] sm:$0xff] %v804_v6 }
 0x17b   : > { %837 = vst [vmem:[%s1291_s30 + $0xc0] sm:$0xff] %v805_v10 }
 0x17c   : > { %838 = vst [vmem:[%s1291_s30 + $0xc8] sm:$0xff] %v806_v45 }
 0x17d   : > { %839 = vst [vmem:[%s1291_s30 + $0xd0] sm:$0xff] %v807_v13 }
 0x17e   : > { %840 = vst [vmem:[%s1291_s30 + $0xd8] sm:$0xff] %v808_v16 }
 0x17f   : > { %841 = vst [vmem:[%s1291_s30 + $0xe0] sm:$0xff] %v809_v15 }
 0x180   : > { %842 = vst [vmem:[%s1291_s30 + $0xe8] sm:$0xff] %v810_v18 }
 0x181   : > { %843 = vst [vmem:[%s1291_s30 + $0xf0] sm:$0xff] %v811_v53 }
 0x182   : > { %844 = vst [vmem:[%s1291_s30 + $0xf8] sm:$0xff] %v812_v19 }
 0x183 PF: > { %s853_s14 = smul.u32 %s1163_s18, %s1167_s19  ;;  %s859_s23 = sshll.u32 %s1291_s30, 4  ;;  %s860_s23 = int_to_ptr.vmem [resolvable:$true] %s859_s23 }
 0x184   : > { %s846_s11 = scalar_lea.sflag [#allocation8], %s218_s8  ;;  %s1105_s19 = scalar_lea.hbm %s1710_s4, 512 }
 0x185   : > { %s991_s24 = sshll.u32 %s853_s14, 8 }
 0x186   : > { %s858_s27 = scalar_lea.hbm %s1710_s4, %s991_s24 }
 0x187   : > { %s861_s9 = sshll.u32 %s858_s27, 4  ;;  %s862_s9 = int_to_ptr.hbm [resolvable:$true] %s861_s9 }
 0x188   : > { %s1099_s10 = sshra.s32 %s862_s9, 4  ;;  %s1100_s10 = int_to_ptr.hbm [resolvable:$true] %s1099_s10 }
 0x189   : > { %s1101_s12 = scalar_lea.hbm %s1100_s10, 256  ;;  %p1106_p7 = scmp.lt.s32.totalorder %s1100_s10, %s1710_s4 }
 0x18a   : > { %p1102_p3 = scmp.ne.s32.totalorder %s1100_s10, %s1101_s12  ;;  %p1107_p9 = scmp.lt.s32.totalorder %s1105_s19, %s1101_s12 }
 0x18c   : > { %p1103_p4 = pnand %p1102_p3, %p1262_p6  ;;  %p1108_p10 = por %p1107_p9, %p1106_p7 }
 0x18e   : > { %p1104_p5 = pneg %p1103_p4 }
 0x190   : > { %p1109_p11 = pnand %p1108_p10, %p1104_p5 }
 0x192   : > { %1112 = shalt.err (!%p1109_p11)
}
 0x193   : > { %s1182_s8 = smov 128   ;;  %s1183_s24 = smov 8  }
 0x194   : > { %1007 = dma.vmem_to_hbm [thread:$0]  (%p1262_p6), %s860_s23, 4096, %s862_s9, %s846_s11, %s1182_s8, %s1182_s8, %s1183_s24  }
 0x195 PF: > { %p1013_p12 = scmp.ge.s32.totalorder %s1179_s22, 2  ;;  %s876_s5 = sand.u32 1, %s1151_s15  }
 0x196   : > { %s877_s6 = scalar_lea.sflag [#allocation8], %s876_s5 }
 0x197   : > { %p1010_p13 = pnand %p1013_p12, %p1269_p8 }
 0x199   : > { %p1011_p0 = pneg %p1010_p13 }
 0x19b   : > { %1146 = dma.done.wait (%p1011_p0), %s877_s6, 4096  }
 0x19c   : > { %1148 = vsyncadd (%p1011_p0), %s877_s6, 4294963200  ;;  %s17_s22 = sadd.s32 1, %s1179_s22   ;;  %s1713_s15 = smov %s1155_s16 }
 0x19d   : > { %p14_p1 = scmp.ge.s32.totalorder %s17_s22, 6   ;;  %s1714_s16 = smov %s1159_s17 }
 0x19e   : > { %s1715_s17 = smov %s1278_s7  ;;  %s1716_s18 = smov %s1171_s20 }
 0x19f   : > { %s1717_s19 = smov %s1175_s21  ;;  %s1718_s20 = smov %s1721_s25 }
 0x1a0   : > { %s1719_s21 = smov %s1725_s26  ;;  %16 = sbr.rel (!%p14_p1) target bundleno = 5 (0x5), region = 89 }
 0x1a5   :  { %883 = vsyncpa [#allocation8], 1 }
 0x1a6   :  { %885 = vsyncpa [#allocation8 + $0x1], 1 }

</bundles_post_ra>
